<compile_context>
chip_gen: v6e
topology: v6e:2x2x1
jax: 0.10.0
libtpu: 0.0.40
codegen_flags: <defaults>
</compile_context>

<pallas_src>
import math
import functools

import jax
import jax.numpy as jnp
from jax import lax
from jax.experimental import pallas as pl
from jax.experimental.pallas import tpu as pltpu


# -----------------------------------------------------------------------------
# Stage 1: fused K/V projection (K emitted pre-transposed)
# -----------------------------------------------------------------------------
def _kv_proj_kernel(x_ref, w_ref, b_ref, kt_ref, v_ref, *, hidden: int):
    H = hidden
    x = x_ref[0].astype(jnp.bfloat16)                         # (ts, H) bf16
    # Packed matmul: (ts, H) @ (H, 2H) with f32 accumulation on the MXU.
    y = jnp.dot(x, w_ref[...], preferred_element_type=jnp.float32) + b_ref[...]
    # K stored transposed (H, ts): one XLU transpose per grid step here instead
    # of nH transposes per query tile in stage 2.
    kt_ref[0] = y[:, 0:H].T.astype(jnp.bfloat16)               # (H, ts)
    v_ref[0] = y[:, H:2 * H].astype(jnp.bfloat16)              # (ts, H)


# -----------------------------------------------------------------------------
# Stage 2: fused Q projection + multi-head attention over query tiles
# -----------------------------------------------------------------------------
def _attn_kernel(mask_ref, x_ref, wq_ref, bq_ref, kt_ref, v_ref, ctx_ref, *rest,
                 num_heads: int, head_size: int, inv_sqrt_d: float):
    ctx_acc = rest[-1]                                         # VMEM (tq, H) f32
    probs_ref = rest[0] if len(rest) == 2 else None

    tq = x_ref.shape[1]
    S = kt_ref.shape[2]

    # Fused Q projection for this query tile (no Q HBM round trip);
    # 1/sqrt(head_size) folded in right here.
    x = x_ref[0].astype(jnp.bfloat16)                          # (tq, H)
    q = (jnp.dot(x, wq_ref[...], preferred_element_type=jnp.float32)
         + bq_ref[...]) * inv_sqrt_d
    q = q.astype(jnp.bfloat16)                                 # (tq, H), scaled

    kt = kt_ref[0]                                             # (H, S) bf16
    v = v_ref[0]                                               # (S, H) bf16

    # Hoisted once per grid step (JAX does not CSE broadcast_in_dim).
    mask_b = jnp.broadcast_to(mask_ref[0, 0], (tq, S))         # (tq, S) f32

    for h in range(num_heads):
        lo = h * head_size
        qh = q[:, lo:lo + head_size]                           # (tq, hd) bf16
        kh = kt[lo:lo + head_size, :]                          # (hd, S)  bf16 (sublane slice)
        vh = v[:, lo:lo + head_size]                           # (S,  hd) bf16

        # scores = q @ k^T : plain (tq,hd)@(hd,S) MXU matmul, no in-loop transpose.
        scores = lax.dot_general(
            qh, kh, dimension_numbers=(((1,), (0,)), ((), ())),
            preferred_element_type=jnp.float32)                # (tq, S) f32
        scores = scores + mask_b

        # Numerically stable softmax (f32).
        m = jnp.max(scores, axis=-1, keepdims=True)
        e = jnp.exp(scores - m)
        denom = jnp.sum(e, axis=-1, keepdims=True)

        if probs_ref is not None:
            # Exact divide so the emitted attention_probs rows sum to 1.
            probs = e / denom
            probs_ref[0, h] = probs.astype(probs_ref.dtype)
        else:
            # Fast path: EUP approximate reciprocal (probs are not emitted).
            probs = e * pl.reciprocal(denom, approx=True)

        # TODO(synk): attention-probs dropout (training mode) and head_mask /
        # encoder cross-attention are not implemented; this is the eval-mode
        # self-attention forward (dropout == identity).

        # Write this head's context slice straight into the VMEM scratch.
        ctx_acc[:, lo:lo + head_size] = lax.dot_general(
            probs.astype(jnp.bfloat16), vh,
            dimension_numbers=(((1,), (0,)), ((), ())),
            preferred_element_type=jnp.float32)                # (tq, hd) f32

    # Single lane-dense (tq, H) store.
    ctx_ref[0] = ctx_acc[...].astype(ctx_ref.dtype)


# -----------------------------------------------------------------------------
# Helpers / wrapper
# -----------------------------------------------------------------------------
def _pick_seq_tile(S: int, cap: int) -> int:
    """Largest multiple of 128 that divides S and is <= cap; else the full S
    (a full-extent block is always layout-legal)."""
    t = min(cap, S)
    t -= t % 128
    while t >= 128:
        if S % t == 0:
            return t
        t -= 128
    return S


def pack_bert_attention_params(params):
    """Pack & cast the projection weights ONCE (outside the per-call hot path)."""
    return {
        "w_q": jnp.asarray(params["wq"], jnp.bfloat16),                       # (H, H)
        "b_q": jnp.asarray(params["bq"], jnp.float32).reshape(1, -1),         # (1, H)
        "w_kv": jnp.concatenate([params["wk"], params["wv"]],
                                axis=1).astype(jnp.bfloat16),                 # (H, 2H)
        "b_kv": jnp.concatenate(
            [jnp.asarray(params["bk"], jnp.float32).reshape(1, -1),
             jnp.asarray(params["bv"], jnp.float32).reshape(1, -1)], axis=1), # (1, 2H)
    }


def bert_self_attention(hidden_states, attention_mask, packed, num_heads: int,
                        *, output_attentions: bool = True,
                        probs_dtype=jnp.bfloat16):
    """hidden_states: (B, S, H) f32; attention_mask: additive (B,1,1,S) or None.
    packed: output of pack_bert_attention_params.
    Returns (context_layer, attention_probs) or (context_layer,)."""
    B, S, H = hidden_states.shape
    head_size = H // num_heads

    if attention_mask is None:
        attention_mask = jnp.zeros((B, 1, 1, S), jnp.float32)
    attention_mask = attention_mask.astype(jnp.float32)

    ts = _pick_seq_tile(S, 512)
    # Cap the query tile when probs are emitted so the double-buffered
    # (1, nH, tq, S) probs block stays within v5e/v7x default scoped VMEM.
    tq = _pick_seq_tile(S, 128 if output_attentions else 256)

    vmem_limit = 64 * 1024 * 1024   # raise scoped VMEM (v5e default is 16 MiB)

    # ---------------- Stage 1: K/V projection ----------------
    kv_fn = pl.pallas_call(
        functools.partial(_kv_proj_kernel, hidden=H),
        out_shape=[jax.ShapeDtypeStruct((B, H, S), jnp.bfloat16),   # K^T
                   jax.ShapeDtypeStruct((B, S, H), jnp.bfloat16)],  # V
        grid_spec=pltpu.PrefetchScalarGridSpec(
            num_scalar_prefetch=0,
            grid=(B, S // ts),
            in_specs=[
                pl.BlockSpec((1, ts, H), lambda b, s: (b, s, 0)),   # x tile
                pl.BlockSpec((H, 2 * H), lambda b, s: (0, 0)),      # packed W_kv
                pl.BlockSpec((1, 2 * H), lambda b, s: (0, 0)),      # packed bias
            ],
            out_specs=[
                pl.BlockSpec((1, H, ts), lambda b, s: (b, 0, s)),   # K^T stripe
                pl.BlockSpec((1, ts, H), lambda b, s: (b, s, 0)),   # V stripe
            ]),
        compiler_params=pltpu.CompilerParams(
            dimension_semantics=("parallel", "parallel"),
            vmem_limit_bytes=vmem_limit),
    )
    k_t, v = kv_fn(hidden_states, packed["w_kv"], packed["b_kv"])

    # ---------------- Stage 2: fused Q projection + attention ----------------
    out_shape = [jax.ShapeDtypeStruct((B, S, H), hidden_states.dtype)]
    out_specs = [pl.BlockSpec((1, tq, H), lambda b, qi: (b, qi, 0))]
    if output_attentions:
        out_shape.append(
            jax.ShapeDtypeStruct((B, num_heads, S, S), probs_dtype))
        out_specs.append(
            pl.BlockSpec((1, num_heads, tq, S), lambda b, qi: (b, 0, qi, 0)))

    attn_fn = pl.pallas_call(
        functools.partial(_attn_kernel, num_heads=num_heads,
                          head_size=head_size,
                          inv_sqrt_d=1.0 / math.sqrt(head_size)),
        out_shape=out_shape,
        grid_spec=pltpu.PrefetchScalarGridSpec(
            num_scalar_prefetch=0,
            grid=(B, S // tq),                       # B leads -> megacore splits on batch
            in_specs=[
                pl.BlockSpec((1, 1, 1, S), lambda b, qi: (b, 0, 0, 0)),  # mask
                pl.BlockSpec((1, tq, H), lambda b, qi: (b, qi, 0)),      # x tile
                pl.BlockSpec((H, H), lambda b, qi: (0, 0)),              # W_q
                pl.BlockSpec((1, H), lambda b, qi: (0, 0)),              # b_q
                pl.BlockSpec((1, H, S), lambda b, qi: (b, 0, 0)),        # K^T (resident/batch)
                pl.BlockSpec((1, S, H), lambda b, qi: (b, 0, 0)),        # V   (resident/batch)
            ],
            out_specs=out_specs,
            scratch_shapes=[pltpu.VMEM((tq, H), jnp.float32)]),
        compiler_params=pltpu.CompilerParams(
            dimension_semantics=("parallel", "parallel"),
            vmem_limit_bytes=vmem_limit),
    )
    outs = attn_fn(attention_mask, hidden_states, packed["w_q"], packed["b_q"],
                   k_t, v)
    if output_attentions:
        ctx, probs = outs
        return ctx, probs
    (ctx,) = outs
    return (ctx,)


# -----------------------------------------------------------------------------
# Pure-JAX f32 reference mirroring the PyTorch forward (eval mode)
# -----------------------------------------------------------------------------
def _reference(hidden_states, attention_mask, params, num_heads):
    B, S, H = hidden_states.shape
    hd = H // num_heads

    def proj(w, b):
        return hidden_states @ w + b                          # (B, S, H)

    def split_heads(x):
        return x.reshape(B, S, num_heads, hd).transpose(0, 2, 1, 3)

    q = split_heads(proj(params["wq"], params["bq"]))
    k = split_heads(proj(params["wk"], params["bk"]))
    v = split_heads(proj(params["wv"], params["bv"]))

    scores = jnp.einsum("bhqd,bhkd->bhqk", q, k) / math.sqrt(hd)
    scores = scores + attention_mask                           # (B,1,1,S) broadcasts
    probs = jax.nn.softmax(scores, axis=-1)
    ctx = jnp.einsum("bhqk,bhkd->bhqd", probs, v)
    ctx = ctx.transpose(0, 2, 1, 3).reshape(B, S, H)
    return ctx, probs


if __name__ == "__main__":
    # Small config consistent with the module: hidden_size % num_heads == 0.
    B, S, H = 2, 8, 32
    NUM_HEADS = 4

    key = jax.random.PRNGKey(0)
    k_x, k_m, k_wq, k_bq, k_wk, k_bk, k_wv, k_bv = jax.random.split(key, 8)

    hidden_states = jax.random.normal(k_x, (B, S, H), dtype=jnp.float32)

    # Additive attention mask: 0 where attended, -10000 where masked (HF style).
    keep = jnp.ones((B, S), dtype=jnp.float32)
    keep = keep.at[1, -2:].set(0.0)
    attention_mask = ((1.0 - keep) * -10000.0)[:, None, None, :]  # (B,1,1,S)

    scale = 0.02
    params = {
        "wq": scale * jax.random.normal(k_wq, (H, H), dtype=jnp.float32),
        "bq": scale * jax.random.normal(k_bq, (1, H), dtype=jnp.float32),
        "wk": scale * jax.random.normal(k_wk, (H, H), dtype=jnp.float32),
        "bk": scale * jax.random.normal(k_bk, (1, H), dtype=jnp.float32),
        "wv": scale * jax.random.normal(k_wv, (H, H), dtype=jnp.float32),
        "bv": scale * jax.random.normal(k_bv, (1, H), dtype=jnp.float32),
    }
    packed = pack_bert_attention_params(params)   # once, outside the hot path

    ctx, probs = bert_self_attention(hidden_states, attention_mask, packed,
                                     num_heads=NUM_HEADS,
                                     output_attentions=True)
    jax.block_until_ready((ctx, probs))

    ctx_ref, probs_ref = _reference(hidden_states, attention_mask, params,
                                    NUM_HEADS)
    # Tolerances relaxed vs f32: matmul operands (and stored probs) are bf16
    # with f32 accumulation; softmax itself stays in f32.
    assert jnp.allclose(ctx, ctx_ref, atol=2e-2, rtol=2e-2), "context mismatch"
    assert jnp.allclose(probs.astype(jnp.float32), probs_ref,
                        atol=2e-2, rtol=2e-2), "probs mismatch"

    # Also exercise the probs-free fast path (no (B,nH,S,S) HBM writeback).
    (ctx_only,) = bert_self_attention(hidden_states, attention_mask, packed,
                                      num_heads=NUM_HEADS,
                                      output_attentions=False)
    jax.block_until_ready(ctx_only)
    assert jnp.allclose(ctx_only, ctx_ref, atol=2e-2, rtol=2e-2), "ctx-only mismatch"

    print("KERNEL_OK")
</pallas_src>

<mosaic_0001>
module attributes {stable_mosaic.version = 11 : i64} {
  func.func @_kv_proj_kernel(%arg0: i32, %arg1: i32, %arg2: memref<1x8x32xf32, #tpu.memory_space<vmem>>, %arg3: memref<32x64xbf16, #tpu.memory_space<vmem>>, %arg4: memref<1x64xf32, #tpu.memory_space<vmem>>, %arg5: memref<1x32x8xbf16, #tpu.memory_space<vmem>>, %arg6: memref<1x8x32xbf16, #tpu.memory_space<vmem>>) attributes {dimension_semantics = [#tpu.dimension_semantics<parallel>, #tpu.dimension_semantics<parallel>], iteration_bounds = array<i64: 2, 1>, scalar_prefetch = 0 : i64, scratch_operands = 0 : i64, tpu.core_type = #tpu.core_type<tc>, window_params = [{transform_indices = @transform_0, window_bounds = array<i64: 1, 8, 32>}, {pipeline_mode = #tpu.pipeline_mode<synchronous>, transform_indices = @transform_1, window_bounds = array<i64: 32, 64>}, {pipeline_mode = #tpu.pipeline_mode<synchronous>, transform_indices = @transform_2, window_bounds = array<i64: 1, 64>}, {transform_indices = @transform_3, window_bounds = array<i64: 1, 32, 8>}, {transform_indices = @transform_4, window_bounds = array<i64: 1, 8, 32>}]} {
    %c0 = arith.constant 0 : index
    %c0_0 = arith.constant 0 : index
    %c0_1 = arith.constant 0 : index
    %0 = vector.load %arg2[%c0, %c0_0, %c0_1] : memref<1x8x32xf32, #tpu.memory_space<vmem>>, vector<1x8x32xf32>
    %1 = vector.shape_cast %0 : vector<1x8x32xf32> to vector<8x32xf32>
    %2 = arith.truncf %1 : vector<8x32xf32> to vector<8x32xbf16>
    %c0_2 = arith.constant 0 : index
    %c0_3 = arith.constant 0 : index
    %3 = vector.load %arg3[%c0_2, %c0_3] : memref<32x64xbf16, #tpu.memory_space<vmem>>, vector<32x64xbf16>
    %cst = arith.constant dense<0.000000e+00> : vector<8x64xf32>
    %4 = tpu.matmul %2, %3, %cst {dimension_numbers = #tpu.dot_dimension_numbers<[1], [0], [0], [1], [0, 0, 1, 1], [], []>} : vector<8x32xbf16>, vector<32x64xbf16>, vector<8x64xf32> -> vector<8x64xf32>
    %c0_4 = arith.constant 0 : index
    %c0_5 = arith.constant 0 : index
    %5 = vector.load %arg4[%c0_4, %c0_5] : memref<1x64xf32, #tpu.memory_space<vmem>>, vector<1x64xf32>
    %6 = vector.broadcast %5 : vector<1x64xf32> to vector<8x64xf32>
    %7 = arith.addf %4, %6 : vector<8x64xf32>
    %8 = vector.extract_strided_slice %7 {offsets = [0, 0], sizes = [8, 32], strides = [1, 1]} : vector<8x64xf32> to vector<8x32xf32>
    %9 = tpu.transpose %8, [1, 0] : vector<8x32xf32> -> vector<32x8xf32>
    %10 = arith.truncf %9 : vector<32x8xf32> to vector<32x8xbf16>
    %c0_6 = arith.constant 0 : index
    %c0_7 = arith.constant 0 : index
    %c0_8 = arith.constant 0 : index
    %11 = vector.load %arg5[%c0_6, %c0_7, %c0_8] : memref<1x32x8xbf16, #tpu.memory_space<vmem>>, vector<1x32x8xbf16>
    %12 = vector.shape_cast %11 : vector<1x32x8xbf16> to vector<32x8xbf16>
    %13 = vector.shape_cast %10 : vector<32x8xbf16> to vector<1x32x8xbf16>
    tpu.vector_store %arg5[%c0_6, %c0_7, %c0_8], %13 {strides = array<i32>} : memref<1x32x8xbf16, #tpu.memory_space<vmem>>, vector<1x32x8xbf16>,
    %14 = vector.extract_strided_slice %7 {offsets = [0, 32], sizes = [8, 32], strides = [1, 1]} : vector<8x64xf32> to vector<8x32xf32>
    %15 = arith.truncf %14 : vector<8x32xf32> to vector<8x32xbf16>
    %c0_9 = arith.constant 0 : index
    %c0_10 = arith.constant 0 : index
    %c0_11 = arith.constant 0 : index
    %16 = vector.load %arg6[%c0_9, %c0_10, %c0_11] : memref<1x8x32xbf16, #tpu.memory_space<vmem>>, vector<1x8x32xbf16>
    %17 = vector.shape_cast %16 : vector<1x8x32xbf16> to vector<8x32xbf16>
    %18 = vector.shape_cast %15 : vector<8x32xbf16> to vector<1x8x32xbf16>
    tpu.vector_store %arg6[%c0_9, %c0_10, %c0_11], %18 {strides = array<i32>} : memref<1x8x32xbf16, #tpu.memory_space<vmem>>, vector<1x8x32xbf16>,
    return
  }
  func.func @transform_0(%arg0: i32, %arg1: i32) -> (i32, i32, i32) {
    %c0_i32 = arith.constant 0 : i32
    %c0_i32_0 = arith.constant 0 : i32
    return %arg0, %arg1, %c0_i32 : i32, i32, i32
  }
  func.func @transform_1(%arg0: i32, %arg1: i32) -> (i32, i32) {
    %c0_i32 = arith.constant 0 : i32
    %c0_i32_0 = arith.constant 0 : i32
    %c0_i32_1 = arith.constant 0 : i32
    return %c0_i32, %c0_i32_0 : i32, i32
  }
  func.func @transform_2(%arg0: i32, %arg1: i32) -> (i32, i32) {
    %c0_i32 = arith.constant 0 : i32
    %c0_i32_0 = arith.constant 0 : i32
    %c0_i32_1 = arith.constant 0 : i32
    return %c0_i32, %c0_i32_0 : i32, i32
  }
  func.func @transform_3(%arg0: i32, %arg1: i32) -> (i32, i32, i32) {
    %c0_i32 = arith.constant 0 : i32
    %c0_i32_0 = arith.constant 0 : i32
    return %arg0, %c0_i32, %arg1 : i32, i32, i32
  }
  func.func @transform_4(%arg0: i32, %arg1: i32) -> (i32, i32, i32) {
    %c0_i32 = arith.constant 0 : i32
    %c0_i32_0 = arith.constant 0 : i32
    return %arg0, %arg1, %c0_i32 : i32, i32, i32
  }
}

</mosaic_0001>

<bundles_post_ra>
// kernel: tpu_custom_call.1
= control target key start
LH: loop header
LB: loop body
LE: loop exit
PB: predicated region body
PF: predicated region fallthrough
CT: control target
= control target key end

     0   :  { %s1028_s0 = inlined_call_operand.hbm [shape: f32[2,8,32], index: 0, kind: input, shape index: {}]   ;;  %s1029_s1 = inlined_call_operand.hbm [shape: bf16[32,64], index: 1, kind: input, shape index: {}]   ;;  %s1030_s2 = inlined_call_operand.vmem [shape: f32[1,64], index: 2, kind: input, shape index: {}]   ;;  %s1031_s3 = inlined_call_operand.vmem [shape: bf16[2,32,8], index: 3, kind: output, shape index: {0}]   ;;  %s1032_s4 = inlined_call_operand.hbm [shape: bf16[2,8,32], index: 4, kind: output, shape index: {1}]  }
   0x1   :  { %1034 = sst [smem:[#allocation11_spill]] %s1029_s1 }
   0x2   :  { %10 = vsyncpa [#allocation3], 0 }
   0x3   :  { %12 = vsyncpa [#allocation3 + $0x1], 0 }
   0x4   :  { %13 = vsyncpa [#allocation6], 0 }
   0x5   :  { %14 = vsyncpa [#allocation4], 0 }
   0x6   :  { %16 = vsyncpa [#allocation4 + $0x1], 0  ;;  %s846_s15 = smov 0   ;;  %s848_s16 = smov 0  }
   0x7   :  { %s850_s17 = smov 0   ;;  %s852_s18 = smov 0  }
   0x8   :  { %s854_s19 = smov 0   ;;  %s856_s20 = smov 0  }
   0x9 LB: > { %s550_s21 = sadd.s32 4294967295, %s811_s20   ;;  %s551_s22 = sadd.s32 4294967294, %s811_s20   ;;  %s811_s20 = sphi %s856_s20, %s22_s20   ;;  %s807_s19 = sphi %s854_s19, %s1052_s19   ;;  %s803_s18 = sphi %s852_s18, %s1051_s18   ;;  %s799_s17 = sphi %s850_s17, %s1050_s17   ;;  %s795_s16 = sphi %s848_s16, %s1049_s16   ;;  %s791_s15 = sphi %s846_s15, %s1048_s15  }
   0xa   : > { %p56_p0 = scmp.ne.s32.totalorder %s795_s16, %s791_s15  ;;  %p880_p1 = scmp.eq.s32.totalorder %s550_s21, 0 }
   0xb   : > { %p884_p2 = scmp.eq.s32.totalorder %s550_s21, 1  ;;  %p158_p3 = scmp.eq.s32.totalorder %s551_s22, 1 }
   0xc   : > { %p890_p4 = por %p880_p1, %p56_p0  ;;  %p552_p5 = scmp.ge.s32.totalorder %s811_s20, 1 }
   0xd   : > { %p895_p6 = por %p158_p3, %p56_p0  ;;  %p165_p7 = scmp.lt.s32.totalorder %s811_s20, 3 }
   0xe   : > { %s1037_s25 = scalar_select %p890_p4, 1, 0 }
   0xf   : > { %s1038_s26 = scalar_select %p895_p6, 1, 0 }
  0x10   : > { %p900_p8 = pnand %p552_p5, %p165_p7  ;;  %s813_s28 = smov [#allocation5]  }
  0x11   : > { %s177_s29 = sshll.u32 %s813_s28, 4  ;;  %s34_s5 = sadd.s32 1, %s807_s19  ;;  %s178_s29 = int_to_ptr.vmem [resolvable:$true] %s177_s29 }
  0x12   : > { %p601_p9 = pneg %p900_p8  ;;  %s684_s6 = scalar_lea.vmem %s178_s29, 256 }
  0x13   : > { %p685_p13 = scmp.ne.s32.totalorder %s178_s29, %s684_s6  ;;  %p692_p5 = scmp.lt.s32.totalorder %s178_s29, %s178_s29 }
  0x14   : > { %p909_p11 = pnand %p601_p9, %p880_p1  ;;  %p693_p7 = scmp.lt.s32.totalorder %s684_s6, %s684_s6 }
  0x16   : > { %p675_p12 = pneg %p909_p11  ;;  %p694_p6 = por %p693_p7, %p692_p5 }
  0x18   : > { %p687_p0 = pnand %p685_p13, %p675_p12 }
  0x1a   : > { %p688_p3 = pneg %p687_p0 }
  0x1c   : > { %p695_p4 = pnand %p694_p6, %p688_p3 }
  0x1e   : > { %698 = shalt.err (!%p695_p4)
}
  0x1f   : > { %s814_s7 = smov 64   ;;  %s815_s8 = smov 4  }
  0x20   : > { %s1041_s1 = sld [smem:[#allocation11_spill]]  ;;  %p36_p6 = scmp.ge.s32.totalorder %s34_s5, 2 }
  0x21   : > { %s43_s11 = sadd.s32 1, %s799_s17  ;;  %p50_p4 = scmp.ne.s32.totalorder %s799_s17, %s795_s16 }
  0x22   : > { %p51_p9 = scmp.eq.s32.totalorder %s811_s20, 0  ;;  %s1054_s5 = smov (%p36_p6, %s34_s5), 0 }
  0x23   : > { %p933_p13 = por %p884_p2, %p50_p4  ;;  %s38_s14 = ssub.s32 %s807_s19, %s1054_s5 }
  0x24   : > { %p927_p12 = por %p51_p9, %p50_p4  ;;  %p614_p0 = scmp.lt.s32.totalorder %s811_s20, 2 }
  0x25   : > { %s194_s21 = sand.u32 1, %s799_s17  }
  0x26   : > { %604 = dma.hbm_to_vmem [thread:$0]  (!%p909_p11), %s1041_s1, 256, %s178_s29, [#allocation6], %s814_s7, %s814_s7, %s815_s8  }
  0x27   : > { %p41_p11 = scmp.eq.s32.totalorder %s38_s14, 0  ;;  %s555_s22 = sshll.u32 %s194_s21, 3 }
  0x28   : > { %s556_s29 = sshll.u32 %s807_s19, 7  ;;  %s198_s8 = scalar_lea.vmem [#allocation2], %s555_s22 }
  0x29   : > { %s942_s28 = scalar_select %p41_p11, %s799_s17, %s43_s11  }
  0x2a   : > { %s204_s7 = scalar_lea.hbm %s1028_s0, %s556_s29  ;;  %s206_s9 = sshll.u32 %s198_s8, 4  ;;  %s207_s9 = int_to_ptr.vmem [resolvable:$true] %s206_s9 }
  0x2b   : > { %p950_p2 = pnand %p614_p0, %p927_p12  ;;  %s195_s10 = scalar_lea.sflag [#allocation3], %s194_s21 }
  0x2c   : > { %s712_s14 = scalar_lea.vmem %s207_s9, 128  ;;  %s816_s11 = smov [#allocation2]  }
  0x2d   : > { %p701_p3 = pneg %p950_p2  ;;  %p713_p5 = scmp.ne.s32.totalorder %s207_s9, %s712_s14 }
  0x2e   : > { %s717_s1 = sshll.u32 %s816_s11, 4  ;;  %s718_s1 = int_to_ptr.vmem [resolvable:$false] %s717_s1 }
  0x2f   : > { %p715_p7 = pnand %p713_p5, %p701_p3  ;;  %s719_s29 = scalar_lea.vmem %s718_s1, 256 }
  0x30   : > { %p720_p4 = scmp.lt.s32.totalorder %s207_s9, %s718_s1  ;;  %p721_p9 = scmp.lt.s32.totalorder %s719_s29, %s712_s14 }
  0x31   : > { %p716_p6 = pneg %p715_p7 }
  0x32   : > { %p722_p11 = por %p721_p9, %p720_p4 }
  0x34   : > { %p723_p10 = pnand %p722_p11, %p716_p6 }
  0x36   : > { %726 = shalt.err (!%p723_p10)
}
  0x37   : > { %608 = dma.hbm_to_vmem [thread:$0]  (!%p950_p2), %s204_s7, 128, %s207_s9, %s195_s10  }
  0x38   : > { %215 = sbr.rel (%p900_p8) target bundleno = 440 (0x1b8), region = 32  ;;  %s961_s12 = sand.u32 (!%p900_p8), 1, %s795_s16  }
  0x39   : > { %s558_s21 = sshll.u32 (!%p900_p8), %s961_s12, 3  ;;  %s218_s22 = scalar_lea.sflag (!%p900_p8), [#allocation3], %s961_s12 }
  0x3a   : > { %s221_s30 = scalar_lea.vmem (!%p900_p8), [#allocation2], %s558_s21  ;;  %p1045_p12 = scmp.ne.s32.totalorder (!%p900_p8), %s1037_s25, 0 }
  0x3d   : > { %778 = dma.done.wait (%p1045_p12), %s218_s22, 128  }
  0x3e   : > { %780 = vsyncadd (%p1045_p12), %s218_s22, 4294967168 }
  0x3f   : > { %782 = dma.done.wait (%p880_p1), [#allocation6], 256  }
  0x40   : > { %784 = vsyncadd (%p880_p1), [#allocation6], 4294967040  ;;  %v817_v0 = vmov 0.0   ;;  %vm818_vm0 = vmmov 0   ;;  %v671_v1 = vld [vmem:[#allocation5 + $0x8] sm:$0xff]   ;;  %v672_v2 = vld [vmem:[#allocation5] sm:$0xff]  }
  0x41   : > { %585 = vmatprep.subr.bf16.mxu0 %v817_v0  ;;  %589 = vmatprep.mubr.msk.bf16.mxu0 %vm818_vm0, %v817_v0  ;;  %v267_v3 = vld [vmem:[%s221_s30] sm:$0xff]  ;;  %vm292_vm1 = vcmask 261120   ;;  %s819_s23 = smov 96   ;;  %s560_s27 = sshll.u32 %s961_s12, 2  ;;  %vm396_vm2 = vcmask 257024  }
  0x42   : > { %586 = vmatpush3.bf16.msra.mxu0 %v671_v1  ;;  %v268_v4 = vpack.c.bf16 %v267_v3, %v267_v3  ;;  %v563_v5 = vld [vmem:[%s1030_s2] ss:$0 sm:$0xff]  ;;  %s573_s6 = sshll.u32 %s803_s18, 6  ;;  %s257_s7 = scalar_lea.vmem [#allocation7], %s560_s27 }
  0x43   : > { %587 = vmatprep.subr.bf16.mxu0 %v817_v0  ;;  %s424_s8 = sshll.u32 %s257_s7, 4  ;;  %s981_s10 = scalar_lea.hbm %s1032_s4, %s573_s6  ;;  %s425_s8 = int_to_ptr.vmem [resolvable:$true] %s424_s8 }
  0x44   : > { %s407_s14 = scalar_lea.sflag [#allocation4], %s961_s12  ;;  %s727_s11 = scalar_lea.vmem %s425_s8, 64 }
  0x45   : > { %p728_p1 = scmp.ne.s32.totalorder %s425_s8, %s727_s11  ;;  %s820_s29 = smov [#allocation7]  }
  0x46   : > { %588 = vmatpush3.bf16.msra.mxu0 %v672_v2  ;;  %s731_s21 = sshll.u32 %s820_s29, 4  ;;  %s732_s21 = int_to_ptr.vmem [resolvable:$false] %s731_s21 }
  0x47   : > { %p729_p8 = pnand %p728_p1, %p933_p13  ;;  %s733_s22 = scalar_lea.vmem %s732_s21, 128 }
  0x48   : > { %p734_p0 = scmp.lt.s32.totalorder %s425_s8, %s732_s21  ;;  %p735_p2 = scmp.lt.s32.totalorder %s733_s22, %s727_s11 }
  0x49   : > { %590 = vmatmul.mubr.msk.bf16.vlgmr.msra.gmra.mxu0 %vm292_vm1, %v268_v4  ;;  %p730_p10 = pneg %p729_p8 }
  0x4a   : > { %p736_p3 = por %p735_p2, %p734_p0 }
  0x4c   : > { %p737_p5 = pnand %p736_p3, %p730_p10 }
 0x109   : > { %v330_v6 = vpop.f32.mrf.mxu0 }
 0x10a   : > { %v331_v7 = vadd.f32 %v563_v5, %v330_v6 }
 0x10b   : > { %v591_v8 = vpop.f32.mrf.mxu0 }
 0x10c   : > { %v581_v9 = vpack.c.bf16 %v331_v7, %v331_v7 }
 0x10d   : > { %v333_v10 = vpop.f32.mrf.mxu0 }
 0x10e   : > { %393 = vrot.lane.b32.xlu0 %v581_v9, %s819_s23 }
 0x10f   : > { %v592_v11 = vpop.f32.mrf.mxu0 }
 0x12c   : > { %336 = vxpose.xlu0.b32.start.end [1/1] (short) (narrow) %v331_v7, 32 }
 0x180   : > { %v394_v12 = vpop.permute.xlu0 %393 }
 0x181   : > { %397 = vst.msk [vmem:[%s257_s7] sm:$0xf] %vm396_vm2, %v394_v12 }
 0x182   : > { %740 = shalt.err (!%p737_p5)
}
 0x183   : > { %s741_s30 = scalar_lea.hbm %s981_s10, 64  ;;  %s745_s25 = scalar_lea.hbm %s1032_s4, 128 }
 0x184   : > { %p742_p7 = scmp.ne.s32.totalorder %s981_s10, %s741_s30  ;;  %p746_p9 = scmp.lt.s32.totalorder %s981_s10, %s1032_s4 }
 0x185   : > { %p747_p11 = scmp.lt.s32.totalorder %s745_s25, %s741_s30 }
 0x186   : > { %p743_p6 = pnand %p742_p7, %p933_p13 }
 0x187   : > { %p748_p12 = por %p747_p11, %p746_p9 }
 0x188   : > { %p744_p4 = pneg %p743_p6 }
 0x18a   : > { %p749_p1 = pnand %p748_p12, %p744_p4 }
 0x18c   : > { %752 = shalt.err (!%p749_p1)
}
 0x18d   : > { %599 = dma.vmem_to_hbm [thread:$0]  (%p933_p13), %s425_s8, 64, %s981_s10, %s407_s14   ;;  %vm384_vm3 = vcmask 60416  }
 0x18e   : > { %p258_p8 = scmp.lt.s32.totalorder %s803_s18, 1 }
 0x190   : > { %s1056_s18 = smov (!%p258_p8, %s803_s18), 1 }
 0x191   : > { %s576_s6 = sshll.u32 %s1056_s18, 4 }
 0x192   : > { %s265_s24 = scalar_lea.vmem %s1031_s3, %s576_s6 }
 0x1a8   : > { %v352_v13 = vpop.trf.xlu0 }
 0x1a9   : > { %v577_v14 = vpack.c.bf16 %v352_v13, %v352_v13 }
 0x1ab   : > { %385 = vst.msk [vmem:[%s265_s24] sm:$0xf] %vm384_vm3, %v577_v14 }
 0x1ac   : > { %v353_v15 = vpop.trf.xlu0 }
 0x1ad   : > { %v578_v16 = vpack.c.bf16 %v353_v15, %v353_v15 }
 0x1af   : > { %386 = vst.msk [vmem:[%s265_s24 + $0x4] sm:$0xf] %vm384_vm3, %v578_v16 }
 0x1b0   : > { %v354_v17 = vpop.trf.xlu0 }
 0x1b1   : > { %v579_v18 = vpack.c.bf16 %v354_v17, %v354_v17 }
 0x1b3   : > { %387 = vst.msk [vmem:[%s265_s24 + $0x8] sm:$0xf] %vm384_vm3, %v579_v18 }
 0x1b4   : > { %v355_v19 = vpop.trf.xlu0 }
 0x1b5   : > { %v580_v20 = vpack.c.bf16 %v355_v19, %v355_v19 }
 0x1b7   : > { %388 = vst.msk [vmem:[%s265_s24 + $0xc] sm:$0xf] %vm384_vm3, %v580_v20 }
 0x1b8 PF: > { %s447_s18 = sand.u32 1, %s791_s15   ;;  %p1046_p13 = scmp.ne.s32.totalorder %s1038_s26, 0 }
 0x1b9   : > { %p1047_p10 = scmp.ge.s32.totalorder %s811_s20, 2  ;;  %s448_s13 = scalar_lea.sflag [#allocation4], %s447_s18 }
 0x1bb   : > { %p610_p0 = pnand %p1047_p10, %p1046_p13 }
 0x1bd   : > { %p611_p2 = pneg %p610_p0 }
 0x1bf   : > { %786 = dma.done.wait (%p611_p2), %s448_s13, 64  }
 0x1c0   : > { %788 = vsyncadd (%p611_p2), %s448_s13, 4294967232  ;;  %s22_s20 = sadd.s32 1, %s811_s20   ;;  %s1048_s15 = smov %s795_s16 }
 0x1c1   : > { %p19_p3 = scmp.ge.s32.totalorder %s22_s20, 4   ;;  %s1049_s16 = smov %s799_s17 }
 0x1c2   : > { %s1050_s17 = smov %s942_s28  ;;  %s1051_s18 = smov %s807_s19 }
 0x1c3   : > { %s1052_s19 = smov %s1054_s5  ;;  %21 = sbr.rel (!%p19_p3) target bundleno = 9 (0x9), region = 93 }
 0x1c8   :  { %453 = vsyncpa [#allocation3], 1 }
 0x1c9   :  { %455 = vsyncpa [#allocation3 + $0x1], 1 }
 0x1ca   :  { %456 = vsyncpa [#allocation6], 1 }
 0x1cb   :  { %457 = vsyncpa [#allocation4], 1 }
 0x1cc   :  { %459 = vsyncpa [#allocation4 + $0x1], 1 }

</bundles_post_ra>
